<compile_context>
chip_gen: v5e
topology: v5e:2x2
jax: 0.10.0
libtpu: 0.0.40
codegen_flags: <defaults>
</compile_context>

<pallas_src>
import jax
import jax.numpy as jnp
from jax.experimental import pallas as pl
from jax.experimental.pallas import tpu as pltpu

HIDDEN = 500       # hidden size of the PyTorch module
HIDDEN_PAD = 512   # lane-aligned (4 x 128)


def _round_up(x, m):
    return (x + m - 1) // m * m


def qvalue_kernel(s_ref, a_ref, w1_ref, w2_ref, b_ref, wo_ref, bo_ref, out_ref):
    # Hidden layer: two skinny matmuls, f32 accumulation, fused bias + relu.
    h = (jnp.dot(s_ref[...], w1_ref[...], preferred_element_type=jnp.float32)
         + jnp.dot(a_ref[...], w2_ref[...], preferred_element_type=jnp.float32)
         + b_ref[...])
    h = jnp.maximum(h, 0.0)
    # Output layer on the MXU (huge slack at K~20): contract the hidden dim of
    # wo_row (1, 512) against the hidden dim of h (tile_b, 512) -> (1, tile_b),
    # i.e. a q@k.T-style transposed matmul. Produces a lane-dense output row
    # with no cross-lane reduce on the VPU/XLU and no relayout.
    q = jax.lax.dot_general(
        wo_ref[...], h,
        dimension_numbers=(((1,), (1,)), ((), ())),
        preferred_element_type=jnp.float32)
    out_ref[...] = (q + bo_ref[0])[None].astype(out_ref.dtype)


def pack_params(params, compute_dtype=jnp.bfloat16):
    """Pad / retype PyTorch-style params into the kernel layout.

    params = (w1, b1, w2, b2, wo, bo) with weights stored TRANSPOSED relative
    to a torch state_dict, i.e. (in_features, out_features); biases are
    (1, out_features).

    Returns (w1p (Ns,512) cdtype, w2p (Na,512) cdtype, b_fused (1,512) f32,
             wo_row (1,512) f32, bo (1,) f32).
    """
    w1, b1, w2, b2, wo, bo = params
    assert w1.ndim == 2 and w1.shape[1] == HIDDEN, w1.shape
    assert w2.ndim == 2 and w2.shape[1] == HIDDEN, w2.shape
    assert b1.shape == (1, HIDDEN) and b2.shape == (1, HIDDEN), (b1.shape, b2.shape)
    assert wo.shape == (HIDDEN, 1) and bo.shape == (1, 1), (wo.shape, bo.shape)

    pad_h = HIDDEN_PAD - HIDDEN
    w1p = jnp.pad(w1, ((0, 0), (0, pad_h))).astype(compute_dtype)      # (Ns, 512)
    w2p = jnp.pad(w2, ((0, 0), (0, pad_h))).astype(compute_dtype)      # (Na, 512)
    b = jnp.pad((b1 + b2).astype(jnp.float32), ((0, 0), (0, pad_h)))   # (1, 512)
    wo_row = jnp.pad(wo.astype(jnp.float32).T, ((0, 0), (0, pad_h)))   # (1, 512)
    bo_s = bo.astype(jnp.float32).reshape(1)                           # (1,) -> SMEM
    return (w1p, w2p, b, wo_row, bo_s)


def qvalue_forward(s, a, packed, *, tile_b=1024):
    """s: (B, N_STATES), a: (B, N_ACTIONS) -> (B, 1) float32."""
    w1p, w2p, b, wo_row, bo = packed
    B, n_states = s.shape
    Ba, n_actions = a.shape
    assert Ba == B, (s.shape, a.shape)
    assert w1p.shape == (n_states, HIDDEN_PAD), (w1p.shape, n_states)
    assert w2p.shape == (n_actions, HIDDEN_PAD), (w2p.shape, n_actions)

    compute_dtype = w1p.dtype
    s = s.astype(compute_dtype)
    a = a.astype(compute_dtype)

    # --- batch tiling -------------------------------------------------------
    Bp8 = _round_up(B, 8)
    tb = _round_up(min(tile_b, Bp8), 8)
    # v7x has 2 TensorCores: keep at least 2 grid steps whenever the batch can
    # be split, so dimension_semantics=("parallel",) actually shards it.
    # Harmless (slight extra grid overhead only) on single-TC v5e/v6e.
    if Bp8 >= 16:
        tb = min(tb, _round_up((Bp8 + 1) // 2, 8))
    Bp = _round_up(B, tb)
    if Bp != B:
        s = jnp.pad(s, ((0, Bp - B), (0, 0)))
        a = jnp.pad(a, ((0, Bp - B), (0, 0)))
    num_tiles = Bp // tb

    def const2d(shape):
        return pl.BlockSpec(shape, lambda i: (0, 0))

    flops = 2 * Bp * HIDDEN_PAD * (n_states + n_actions + 1)
    bytes_accessed = (s.size * s.dtype.itemsize + a.size * a.dtype.itemsize
                      + w1p.size * w1p.dtype.itemsize
                      + w2p.size * w2p.dtype.itemsize
                      + b.size * 4 + wo_row.size * 4 + 4
                      + Bp * 4)
    cost = pl.CostEstimate(flops=flops, transcendentals=0,
                           bytes_accessed=bytes_accessed)

    out = pl.pallas_call(
        qvalue_kernel,
        out_shape=jax.ShapeDtypeStruct((num_tiles, 1, tb), jnp.float32),
        grid=(num_tiles,),
        in_specs=[
            pl.BlockSpec((tb, n_states), lambda i: (i, 0)),    # s batch tile
            pl.BlockSpec((tb, n_actions), lambda i: (i, 0)),   # a batch tile
            const2d(w1p.shape),     # (N_STATES, 512) hidden weight, resident
            const2d(w2p.shape),     # (N_ACTIONS, 512) hidden weight, resident
            const2d(b.shape),       # (1, 512) fused bias (b1 + b2)
            const2d(wo_row.shape),  # (1, 512) output weight row (lane-dense)
            pl.BlockSpec(memory_space=pltpu.MemorySpace.SMEM),  # bo scalar
        ],
        out_specs=pl.BlockSpec((1, 1, tb), lambda i: (i, 0, 0)),
        compiler_params=pltpu.CompilerParams(
            dimension_semantics=("parallel",)),
        cost_estimate=cost,
    )(s, a, w1p, w2p, b, wo_row, bo)

    # (num_tiles, 1, tb) is already in batch-row-major order; drop pad rows.
    return out.reshape(Bp, 1)[:B]


def init_params(key, n_states, n_actions):
    """Deterministic synthetic init mirroring the PyTorch module:
    weights ~ N(0, 0.1); biases small deterministic uniforms.
    Weights are stored as (in_features, out_features)."""
    k1, k2, k3, k4, k5, k6 = jax.random.split(key, 6)
    w1 = 0.1 * jax.random.normal(k1, (n_states, HIDDEN), jnp.float32)
    b1 = 0.01 * jax.random.uniform(k2, (1, HIDDEN), jnp.float32, -1.0, 1.0)
    w2 = 0.1 * jax.random.normal(k3, (n_actions, HIDDEN), jnp.float32)
    b2 = 0.01 * jax.random.uniform(k4, (1, HIDDEN), jnp.float32, -1.0, 1.0)
    wo = 0.1 * jax.random.normal(k5, (HIDDEN, 1), jnp.float32)
    bo = 0.01 * jax.random.uniform(k6, (1, 1), jnp.float32, -1.0, 1.0)
    return (w1, b1, w2, b2, wo, bo)


def reference_forward(s, a, params):
    w1, b1, w2, b2, wo, bo = params
    hp = jax.lax.Precision.HIGHEST
    h = jnp.maximum(jnp.dot(s, w1, precision=hp) + b1
                    + jnp.dot(a, w2, precision=hp) + b2, 0.0)
    return jnp.dot(h, wo, precision=hp) + bo


if __name__ == "__main__":
    B, N_STATES, N_ACTIONS = 12, 16, 4   # B not a multiple of 8: exercises pad

    key = jax.random.PRNGKey(0)
    ks, ka, kp = jax.random.split(key, 3)
    s = jax.random.normal(ks, (B, N_STATES), jnp.float32)
    a = jax.random.normal(ka, (B, N_ACTIONS), jnp.float32)
    params = init_params(kp, N_STATES, N_ACTIONS)
    ref = reference_forward(s, a, params)

    # f32 parity path (tight tolerance).
    packed_f32 = pack_params(params, compute_dtype=jnp.float32)
    out = jax.block_until_ready(qvalue_forward(s, a, packed_f32))
    assert out.shape == (B, 1), out.shape
    assert jnp.allclose(out, ref, atol=1e-3, rtol=1e-3), (out, ref)

    # Explicit small tile -> multi-step "parallel" batch grid.
    out2 = jax.block_until_ready(qvalue_forward(s, a, packed_f32, tile_b=8))
    assert out2.shape == (B, 1), out2.shape
    assert jnp.allclose(out2, ref, atol=1e-3, rtol=1e-3), (out2, ref)

    # Default bf16 activations/weights (f32 accumulation + epilogue): looser
    # tolerance since inputs/weights are rounded to bf16.
    packed_bf16 = pack_params(params)
    out3 = jax.block_until_ready(qvalue_forward(s, a, packed_bf16))
    assert out3.shape == (B, 1), out3.shape
    assert jnp.allclose(out3, ref, atol=5e-2, rtol=5e-2), (out3, ref)

    print("KERNEL_OK")
</pallas_src>

<mosaic_0001>
module attributes {stable_mosaic.version = 11 : i64} {
  func.func @qvalue_kernel(%arg0: i32, %arg1: memref<8x16xf32, #tpu.memory_space<vmem>>, %arg2: memref<8x4xf32, #tpu.memory_space<vmem>>, %arg3: memref<16x512xf32, #tpu.memory_space<vmem>>, %arg4: memref<4x512xf32, #tpu.memory_space<vmem>>, %arg5: memref<1x512xf32, #tpu.memory_space<vmem>>, %arg6: memref<1x512xf32, #tpu.memory_space<vmem>>, %arg7: memref<1xf32, #tpu.memory_space<smem>>, %arg8: memref<1x1x8xf32, #tpu.memory_space<vmem>>) attributes {dimension_semantics = [#tpu.dimension_semantics<parallel>], iteration_bounds = array<i64: 2>, scalar_prefetch = 0 : i64, scratch_operands = 0 : i64, tpu.core_type = #tpu.core_type<tc>, window_params = [{transform_indices = @transform_0, window_bounds = array<i64: 8, 16>}, {transform_indices = @transform_1, window_bounds = array<i64: 8, 4>}, {pipeline_mode = #tpu.pipeline_mode<synchronous>, transform_indices = @transform_2, window_bounds = array<i64: 16, 512>}, {pipeline_mode = #tpu.pipeline_mode<synchronous>, transform_indices = @transform_3, window_bounds = array<i64: 4, 512>}, {pipeline_mode = #tpu.pipeline_mode<synchronous>, transform_indices = @transform_4, window_bounds = array<i64: 1, 512>}, {pipeline_mode = #tpu.pipeline_mode<synchronous>, transform_indices = @transform_5, window_bounds = array<i64: 1, 512>}, {transform_indices = @transform_6, window_bounds = array<i64: 1>}, {transform_indices = @transform_7, window_bounds = array<i64: 1, 1, 8>}]} {
    %c0 = arith.constant 0 : index
    %c0_0 = arith.constant 0 : index
    %0 = vector.load %arg1[%c0, %c0_0] : memref<8x16xf32, #tpu.memory_space<vmem>>, vector<8x16xf32>
    %c0_1 = arith.constant 0 : index
    %c0_2 = arith.constant 0 : index
    %1 = vector.load %arg3[%c0_1, %c0_2] : memref<16x512xf32, #tpu.memory_space<vmem>>, vector<16x512xf32>
    %cst = arith.constant dense<0.000000e+00> : vector<8x512xf32>
    %2 = tpu.matmul %0, %1, %cst {dimension_numbers = #tpu.dot_dimension_numbers<[1], [0], [0], [1], [0, 0, 1, 1], [], []>} : vector<8x16xf32>, vector<16x512xf32>, vector<8x512xf32> -> vector<8x512xf32>
    %c0_3 = arith.constant 0 : index
    %c0_4 = arith.constant 0 : index
    %3 = vector.load %arg2[%c0_3, %c0_4] : memref<8x4xf32, #tpu.memory_space<vmem>>, vector<8x4xf32>
    %c0_5 = arith.constant 0 : index
    %c0_6 = arith.constant 0 : index
    %4 = vector.load %arg4[%c0_5, %c0_6] : memref<4x512xf32, #tpu.memory_space<vmem>>, vector<4x512xf32>
    %cst_7 = arith.constant dense<0.000000e+00> : vector<8x512xf32>
    %5 = tpu.matmul %3, %4, %cst_7 {dimension_numbers = #tpu.dot_dimension_numbers<[1], [0], [0], [1], [0, 0, 1, 1], [], []>} : vector<8x4xf32>, vector<4x512xf32>, vector<8x512xf32> -> vector<8x512xf32>
    %6 = arith.addf %2, %5 : vector<8x512xf32>
    %c0_8 = arith.constant 0 : index
    %c0_9 = arith.constant 0 : index
    %7 = vector.load %arg5[%c0_8, %c0_9] : memref<1x512xf32, #tpu.memory_space<vmem>>, vector<1x512xf32>
    %8 = vector.broadcast %7 : vector<1x512xf32> to vector<8x512xf32>
    %9 = arith.addf %6, %8 : vector<8x512xf32>
    %cst_10 = arith.constant 0.000000e+00 : f32
    %10 = vector.broadcast %cst_10 : f32 to vector<8x512xf32>
    %11 = arith.maximumf %9, %10 : vector<8x512xf32>
    %c0_11 = arith.constant 0 : index
    %c0_12 = arith.constant 0 : index
    %12 = vector.load %arg6[%c0_11, %c0_12] : memref<1x512xf32, #tpu.memory_space<vmem>>, vector<1x512xf32>
    %cst_13 = arith.constant dense<0.000000e+00> : vector<1x8xf32>
    %13 = tpu.matmul %12, %11, %cst_13 {dimension_numbers = #tpu.dot_dimension_numbers<[1], [1], [0], [0], [0, 0, 1, 0], [], []>} : vector<1x512xf32>, vector<8x512xf32>, vector<1x8xf32> -> vector<1x8xf32>
    %c0_14 = arith.constant 0 : index
    %14 = memref.load %arg7[%c0_14] : memref<1xf32, #tpu.memory_space<smem>>
    %15 = vector.broadcast %14 : f32 to vector<1x8xf32>
    %16 = arith.addf %13, %15 : vector<1x8xf32>
    %17 = vector.shape_cast %16 : vector<1x8xf32> to vector<1x1x8xf32>
    %c0_15 = arith.constant 0 : index
    %c0_16 = arith.constant 0 : index
    %c0_17 = arith.constant 0 : index
    %18 = vector.load %arg8[%c0_15, %c0_16, %c0_17] : memref<1x1x8xf32, #tpu.memory_space<vmem>>, vector<1x1x8xf32>
    tpu.vector_store %arg8[%c0_15, %c0_16, %c0_17], %17 {strides = array<i32>} : memref<1x1x8xf32, #tpu.memory_space<vmem>>, vector<1x1x8xf32>,
    return
  }
  func.func @transform_0(%arg0: i32) -> (i32, i32) {
    %c0_i32 = arith.constant 0 : i32
    %c0_i32_0 = arith.constant 0 : i32
    return %arg0, %c0_i32 : i32, i32
  }
  func.func @transform_1(%arg0: i32) -> (i32, i32) {
    %c0_i32 = arith.constant 0 : i32
    %c0_i32_0 = arith.constant 0 : i32
    return %arg0, %c0_i32 : i32, i32
  }
  func.func @transform_2(%arg0: i32) -> (i32, i32) {
    %c0_i32 = arith.constant 0 : i32
    %c0_i32_0 = arith.constant 0 : i32
    %c0_i32_1 = arith.constant 0 : i32
    return %c0_i32, %c0_i32_0 : i32, i32
  }
  func.func @transform_3(%arg0: i32) -> (i32, i32) {
    %c0_i32 = arith.constant 0 : i32
    %c0_i32_0 = arith.constant 0 : i32
    %c0_i32_1 = arith.constant 0 : i32
    return %c0_i32, %c0_i32_0 : i32, i32
  }
  func.func @transform_4(%arg0: i32) -> (i32, i32) {
    %c0_i32 = arith.constant 0 : i32
    %c0_i32_0 = arith.constant 0 : i32
    %c0_i32_1 = arith.constant 0 : i32
    return %c0_i32, %c0_i32_0 : i32, i32
  }
  func.func @transform_5(%arg0: i32) -> (i32, i32) {
    %c0_i32 = arith.constant 0 : i32
    %c0_i32_0 = arith.constant 0 : i32
    %c0_i32_1 = arith.constant 0 : i32
    return %c0_i32, %c0_i32_0 : i32, i32
  }
  func.func @transform_6(%arg0: i32) -> i32 {
    %c0_i32 = arith.constant 0 : i32
    %c0_i32_0 = arith.constant 0 : i32
    return %c0_i32 : i32
  }
  func.func @transform_7(%arg0: i32) -> (i32, i32, i32) {
    %c0_i32 = arith.constant 0 : i32
    %c0_i32_0 = arith.constant 0 : i32
    %c0_i32_1 = arith.constant 0 : i32
    return %arg0, %c0_i32, %c0_i32_0 : i32, i32, i32
  }
}

</mosaic_0001>

<bundles_post_ra>
// kernel: tpu_custom_call.1
= control target key start
LH: loop header
LB: loop body
LE: loop exit
PB: predicated region body
PF: predicated region fallthrough
CT: control target
= control target key end

     0   :  { %s1126_s0 = inlined_call_operand.vmem [shape: f32[16,16], index: 0, kind: input, shape index: {}]   ;;  %s1127_s1 = inlined_call_operand.vmem [shape: f32[16,4], index: 1, kind: input, shape index: {}]   ;;  %s1128_s2 = inlined_call_operand.hbm [shape: f32[16,512], index: 2, kind: input, shape index: {}]   ;;  %s1129_s3 = inlined_call_operand.hbm [shape: f32[4,512], index: 3, kind: input, shape index: {}]   ;;  %s1130_s4 = inlined_call_operand.vmem [shape: f32[1,512], index: 4, kind: input, shape index: {}]   ;;  %s1131_s5 = inlined_call_operand.vmem [shape: f32[1,512], index: 5, kind: input, shape index: {}]   ;;  %s1132_s6 = inlined_call_operand.<no memory space> [shape: f32[1], index: 6, kind: input, shape index: {}]   ;;  %s1133_s7 = inlined_call_operand.hbm [shape: f32[2,1,8], index: 7, kind: output, shape index: {}]  }
   0x1   :  { %12 = sst [smem:[#allocation2]] %s1132_s6 }
   0x2   :  { %13 = vsyncpa [#allocation4], 0 }
   0x3   :  { %14 = vsyncpa [#allocation7], 0 }
   0x4   :  { %15 = vsyncpa [#allocation5], 0 }
   0x5   :  { %17 = vsyncpa [#allocation5 + $0x1], 0  ;;  %s1000_s26 = smov 0   ;;  %s1002_s27 = smov 0  }
   0x6   :  { %s1004_s28 = smov 0   ;;  %s1006_s29 = smov 0  }
   0x7 LB: > { %s1021_s6 = sadd.s32 4294967295, %s951_s29   ;;  %s735_s30 = sadd.s32 4294967294, %s951_s29   ;;  %s951_s29 = sphi %s1006_s29, %s1140_s29   ;;  %s947_s28 = sphi %s1004_s28, %s1139_s28   ;;  %s943_s27 = sphi %s1002_s27, %s1138_s27   ;;  %s939_s26 = sphi %s1000_s26, %s1137_s26  }
   0x8   : > { %s1025_s8 = sadd.s32 1, %s951_s29   ;;  %s187_s9 = sadd.s32 1, %s947_s28 }
   0x9   : > { %s184_s10 = ssub.s32 %s951_s29, %s1025_s8  ;;  %p197_p0 = scmp.ne.s32.totalorder %s947_s28, %s943_s27 }
   0xa   : > { %p185_p1 = scmp.eq.s32.totalorder %s184_s10, 0  ;;  %p198_p2 = scmp.eq.s32.totalorder %s1021_s6, 1 }
   0xb   : > { %p203_p3 = scmp.ne.s32.totalorder %s943_s27, %s939_s26  ;;  %p204_p4 = scmp.eq.s32.totalorder %s735_s30, 1 }
   0xc   : > { %s1036_s11 = scalar_select %p185_p1, %s947_s28, %s187_s9  }
   0xd   : > { %p1038_p5 = por %p198_p2, %p197_p0  ;;  %p1042_p6 = por %p204_p4, %p203_p3 }
   0xe   : > { %p736_p7 = scmp.ge.s32.totalorder %s951_s29, 1  ;;  %p211_p8 = scmp.lt.s32.totalorder %s951_s29, 3 }
   0xf   : > { %p780_p9 = scmp.eq.s32.totalorder %s1021_s6, 0  ;;  %s222_s17 = sshll.u32 %s1128_s2, 4  ;;  %s223_s17 = int_to_ptr.hbm [resolvable:$true] %s222_s17 }
  0x10   : > { %p1049_p10 = pnand %p736_p7, %p211_p8  ;;  %s953_s18 = smov [#allocation3]  }
  0x11   : > { %s224_s19 = sshll.u32 %s953_s18, 4  ;;  %s237_s22 = sshll.u32 %s1129_s3, 4  ;;  %s225_s19 = int_to_ptr.vmem [resolvable:$true] %s224_s19  ;;  %s238_s22 = int_to_ptr.hbm [resolvable:$true] %s237_s22 }
  0x12   : > { %p769_p11 = pneg %p1049_p10  ;;  %s954_s23 = smov 512  }
  0x13   : > { %s955_s24 = smov 32   ;;  %s956_s25 = smov [#allocation6]  }
  0x14   : > { %p770_p12 = pnand %p780_p9, %p769_p11  ;;  %s239_s30 = sshll.u32 %s956_s25, 4  ;;  %s240_s30 = int_to_ptr.vmem [resolvable:$true] %s239_s30 }
  0x15   : > { %275 = sbr.rel (%p1049_p10) target bundleno = 328 (0x148), region = 48 }
  0x16   : > { %772 = dma.hbm_to_vmem [thread:$0]  (!%p770_p12), %s223_s17, 1024, %s225_s19, [#allocation4], %s954_s23, %s954_s23, %s955_s24  }
  0x17   : > { %775 = dma.hbm_to_vmem [thread:$0]  (!%p770_p12), %s238_s22, 256, %s240_s30, [#allocation7]  }
  0x1a   : > { %926 = dma.done.wait (%p780_p9), [#allocation4], 1024  }
  0x1b   : > { %928 = vsyncadd (%p780_p9), [#allocation4], 4294966272 }
  0x1c   : > { %930 = dma.done.wait (%p780_p9), [#allocation7], 256  }
  0x1d   : > { %932 = vsyncadd (%p780_p9), [#allocation7], 4294967040  ;;  %p315_p13 = scmp.lt.s32.totalorder %s1021_s6, 1  ;;  %v333_v0 = vld [vmem:[#allocation6] sm:$0xff]  ;;  %v334_v1 = vld [vmem:[#allocation6 + $0x8] sm:$0xff]  ;;  %vm348_vm0 = vcmask 1043456  }
  0x1e   : > { %337 = vst [vmem:[#allocation1] ss:$2 sm:$0xff] %v333_v0  ;;  %vm344_vm1 = vcmask 31744   ;;  %v328_v7 = vld [vmem:[#allocation3 + $0x20] sm:$0xff]  ;;  %v330_v8 = vld [vmem:[#allocation3 + $0x30] sm:$0xff]  ;;  %v331_v9 = vld [vmem:[#allocation3 + $0x38] sm:$0xff] }
  0x1f   : > { %s1075_s9 = scalar_select %p315_p13, %s1021_s6, 1  ;;  %339 = vst [vmem:[#allocation1 + $0x10] ss:$2 sm:$0xff] %v334_v1  ;;  %v329_v10 = vld [vmem:[#allocation3 + $0x28] sm:$0xff]  ;;  %v324_v11 = vld [vmem:[#allocation3] sm:$0xff]  ;;  %v326_v12 = vld [vmem:[#allocation3 + $0x10] sm:$0xff] }
  0x20   : > { %v327_v13 = vld [vmem:[#allocation3 + $0x18] sm:$0xff]  ;;  %v325_v14 = vld [vmem:[#allocation3 + $0x8] sm:$0xff]  ;;  %vm437_vm2 = vcmask 130048   ;;  %s540_s24 = sld [smem:[#allocation2]]  ;;  %s313_s25 = sand.u32 1, %s943_s27   ;;  %vm631_vm3 = vcmask 57344  }
  0x21   : > { %s743_s10 = sshll.u32 %s1075_s9, 3  ;;  %v521_v18 = vld [vmem:[%s1130_s4] sm:$0xf]  ;;  %s314_s14 = scalar_lea.vmem [#allocation8], %s313_s25 }
  0x22   : > { %s322_s16 = scalar_lea.vmem %s1127_s1, %s743_s10  ;;  %s318_s19 = scalar_lea.vmem %s1126_s0, %s743_s10  ;;  %v523_v21 = vperm.slane %v521_v18, 0  ;;  %v524_v23 = vperm.slane %v521_v18, 1  ;;  %v525_v30 = vperm.slane %v521_v18, 2  ;;  %v539_v31 = vld [vmem:[%s1131_s5] sm:$0xf]  ;;  %v526_v34 = vperm.slane %v521_v18, 3 }
  0x23   : > { %v332_v2 = vld [vmem:[%s322_s16] sm:$0xff]  ;;  %v543_v35 = vperm.slane %v539_v31, 0  ;;  %v544_v38 = vperm.slane %v539_v31, 1  ;;  %v545_v44 = vperm.slane %v539_v31, 2  ;;  %v546_v45 = vperm.slane %v539_v31, 3  ;;  %s642_s10 = scalar_lea.hbm %s1133_s7, %s1021_s6  ;;  %s644_s15 = sshll.u32 %s314_s14, 4  ;;  %s645_s15 = int_to_ptr.vmem [resolvable:$true] %s644_s15 }
  0x24   : > { %v323_v15 = vld [vmem:[%s318_s19] sm:$0xff]  ;;  %s646_s16 = sshll.u32 %s642_s10, 4  ;;  %s634_s17 = scalar_lea.sflag [#allocation5], %s313_s25  ;;  %s647_s16 = int_to_ptr.hbm [resolvable:$true] %s646_s16 }
  0x25   : > { %v340_v3 = vld.sshfl [vmem:[#allocation1] sm:$0xff pattern:$0x75316420]  ;;  %v341_v4 = vld.sshfl [vmem:[#allocation1 + $0x8] sm:$0xff pattern:$0x75316420] }
  0x26   : > { %745 = vmatpush.msk.msra.mxu0 %vm348_vm0, %v340_v3  ;;  %v342_v5 = vld.sshfl [vmem:[#allocation1 + $0x10] sm:$0xff pattern:$0x75316420]  ;;  %v343_v6 = vld.sshfl [vmem:[#allocation1 + $0x18] sm:$0xff pattern:$0x75316420]  ;;  %747 = vmatpush.msk.msra.mxu1 %vm348_vm0, %v341_v4  ;;  %v541_v46 = vstv %s540_s24 }
  0x27   : > { %749 = vmatpush.msk.msra.mxu2 %vm348_vm0, %v342_v5  ;;  %751 = vmatpush.msk.msra.mxu3 %vm348_vm0, %v343_v6  ;;  %s895_s18 = sshra.s32 %s647_s16, 4  ;;  %s901_s21 = scalar_lea.hbm %s1133_s7, 2  ;;  %s896_s18 = int_to_ptr.hbm [resolvable:$true] %s895_s18 }
  0x28   : > { %746 = vmatmul.msk.f32.vlgmr.msra.gmra.mxu0 %vm344_vm1, %v332_v2  ;;  %750 = vmatmul.msk.f32.vlgmr.msra.gmra.mxu2 %vm344_vm1, %v332_v2  ;;  %s897_s19 = scalar_lea.hbm %s896_s18, 1  ;;  %p902_p3 = scmp.lt.s32.totalorder %s896_s18, %s1133_s7 }
  0x29   : > { %752 = vmatmul.msk.f32.vlgmr.msra.gmra.mxu3 %vm344_vm1, %v332_v2  ;;  %748 = vmatmul.msk.f32.vlgmr.msra.gmra.mxu1 %vm344_vm1, %v332_v2  ;;  %p898_p0 = scmp.ne.s32.totalorder %s896_s18, %s897_s19  ;;  %p903_p4 = scmp.lt.s32.totalorder %s901_s21, %s897_s19 }
  0x2a   : > { %455 = vmatpush.msrb.mxu0 %v328_v7  ;;  %495 = vmatpush.msrb.mxu2 %v330_v8 }
  0x2b   : > { %515 = vmatpush.msrb.mxu3 %v331_v9  ;;  %475 = vmatpush.msrb.mxu1 %v329_v10  ;;  %p899_p1 = pnand %p898_p0, %p1038_p5  ;;  %p904_p7 = por %p903_p4, %p902_p3 }
  0x2c   : > { %456 = vmatpush.msrb.mxu0 %v324_v11  ;;  %496 = vmatpush.msrb.mxu2 %v326_v12 }
  0x2d   : > { %516 = vmatpush.msrb.mxu3 %v327_v13  ;;  %476 = vmatpush.msrb.mxu1 %v325_v14  ;;  %p900_p2 = pneg %p899_p1 }
  0x2f   : > { %p905_p8 = pnand %p904_p7, %p900_p2 }
  0x30   : > { %753 = vmatmul.msk.f32.vlgmr.msrb.gmra.mxu0 %vm437_vm2, %v323_v15  ;;  %755 = vmatmul.msk.f32.vlgmr.msrb.gmra.mxu2 %vm437_vm2, %v323_v15 }
  0x31   : > { %756 = vmatmul.msk.f32.vlgmr.msrb.gmra.mxu3 %vm437_vm2, %v323_v15  ;;  %754 = vmatmul.msk.f32.vlgmr.msrb.gmra.mxu1 %vm437_vm2, %v323_v15 }
  0xa5   : > { %v374_v16 = vpop.f32.mrf.mxu0 }
  0xa6   : > { %v394_v17 = vpop.f32.mrf.mxu1 }
  0xab   : > { %v414_v19 = vpop.f32.mrf.mxu2 }
  0xac   : > { %v434_v20 = vpop.f32.mrf.mxu3 }
  0xad   : > { %v458_v22 = vpop.f32.mrf.mxu0 }
  0xae   : > { %v459_v24 = vadd.f32 %v458_v22, %v374_v16  ;;  %v478_v25 = vpop.f32.mrf.mxu1 }
  0xaf   : > { %v479_v26 = vadd.f32 %v478_v25, %v394_v17 }
  0xb0   : > { %v531_v27 = vadd.f32 %v523_v21, %v459_v24 }
  0xb1   : > { %v532_v28 = vadd.f32 %v524_v23, %v479_v26 }
  0xb2   : > { %v535_v29 = vmax.f32 %v531_v27, 0.0 }
  0xb3   : > { %v536_v32 = vmax.f32 %v532_v28, 0.0  ;;  %v498_v33 = vpop.f32.mrf.mxu2 }
  0xb4   : > { %v499_v36 = vadd.f32 %v498_v33, %v414_v19  ;;  %v518_v37 = vpop.f32.mrf.mxu3  ;;  %566 = vmatpush.xpose.msra.mxu0 %v535_v29 }
  0xb5   : > { %v519_v39 = vadd.f32 %v518_v37, %v434_v20  ;;  %586 = vmatpush.xpose.msra.mxu1 %v536_v32 }
  0xb6   : > { %v533_v40 = vadd.f32 %v525_v30, %v499_v36 }
  0xb7   : > { %v534_v41 = vadd.f32 %v526_v34, %v519_v39  ;;  %567 = vmatmul.f32.vlgmr.msra.gmra.mxu0 %v543_v35 }
  0xb8   : > { %v537_v42 = vmax.f32 %v533_v40, 0.0  ;;  %587 = vmatmul.f32.vlgmr.msra.gmra.mxu1 %v544_v38 }
  0xb9   : > { %v538_v43 = vmax.f32 %v534_v41, 0.0 }
  0xba   : > { %606 = vmatpush.xpose.msra.mxu2 %v537_v42 }
  0xbb   : > { %626 = vmatpush.xpose.msra.mxu3 %v538_v43 }
  0xbd   : > { %607 = vmatmul.f32.vlgmr.msra.gmra.mxu2 %v545_v44 }
  0xbe   : > { %627 = vmatmul.f32.vlgmr.msra.gmra.mxu3 %v546_v45 }
 0x134   : > { %v568_v47 = vpop.f32.mrf.mxu0 }
 0x135   : > { %v569_v48 = vadd.f32 %v568_v47, %v541_v46  ;;  %v588_v49 = vpop.f32.mrf.mxu1 }
 0x137   : > { %v589_v50 = vadd.f32 %v588_v49, %v569_v48 }
 0x140   : > { %v608_v51 = vpop.f32.mrf.mxu2 }
 0x141   : > { %v609_v52 = vadd.f32 %v608_v51, %v589_v50  ;;  %v628_v53 = vpop.f32.mrf.mxu3 }
 0x143   : > { %v629_v54 = vadd.f32 %v628_v53, %v609_v52 }
 0x145   : > { %632 = vst.msk [vmem:[%s314_s14] sm:$0x1] %vm631_vm3, %v629_v54 }
 0x146   : > { %908 = shalt.err (!%p905_p8)
}
 0x147   : > { %767 = dma.vmem_to_hbm [thread:$0]  (%p1038_p5), %s645_s15, 16, %s647_s16, %s634_s17  }
 0x148 PF: > { %p784_p9 = scmp.ge.s32.totalorder %s951_s29, 2  ;;  %s658_s24 = sand.u32 1, %s939_s26  }
 0x149   : > { %s659_s25 = scalar_lea.sflag [#allocation5], %s658_s24 }
 0x14a   : > { %p777_p10 = pnand %p784_p9, %p1042_p6 }
 0x14c   : > { %p778_p11 = pneg %p777_p10 }
 0x14e   : > { %934 = dma.done.wait (%p778_p11), %s659_s25, 16  }
 0x14f   : > { %936 = vsyncadd (%p778_p11), %s659_s25, 4294967280  ;;  %p20_p12 = scmp.ge.s32.totalorder %s1025_s8, 4   ;;  %s1137_s26 = smov %s943_s27 }
 0x150   : > { %s1138_s27 = smov %s947_s28  ;;  %s1139_s28 = smov %s1036_s11 }
 0x151   : > { %s1140_s29 = smov %s1025_s8  ;;  %22 = sbr.rel (!%p20_p12) target bundleno = 7 (0x7), region = 96 }
 0x156   :  { %664 = vsyncpa [#allocation4], 1 }
 0x157   :  { %666 = vsyncpa [#allocation4 + $0x1], 1 }
 0x158   :  { %667 = vsyncpa [#allocation7], 1 }
 0x159   :  { %668 = vsyncpa [#allocation5], 1 }
 0x15a   :  { %670 = vsyncpa [#allocation5 + $0x1], 1 }

</bundles_post_ra>
